<compile_context>
chip_gen: v7x
topology: tpu7x:2x2x1
jax: 0.10.0
libtpu: 0.0.40
codegen_flags: <defaults>
</compile_context>

<pallas_src>
import functools

import jax
import jax.numpy as jnp
from jax.experimental import pallas as pl
from jax.experimental.pallas import tpu as pltpu

EPS = 1e-6


def _round_up(a, m):
    return (a + m - 1) // m * m


def _residual_kernel(x_ref, w_ref, b_ref, ab_ref, o_ref, *, f_valid):
    """One [TM, Fp] row tile of: out = x + Linear(LayerNorm(x)).

    x_ref : [TM, Fp] f32      (Fp = F padded up to a multiple of 128, zero pad)
    w_ref : [Fp, Fp] bf16     (zero-padded rows/cols)
    b_ref : [1, Fp]  f32      (zero-padded)
    ab_ref: [2]      f32 SMEM (alpha, bias) scalars of LayerNormalization
    """
    x = x_ref[...].astype(jnp.float32)
    fp = x.shape[-1]

    alpha = ab_ref[0]
    beta = ab_ref[1]

    # ---- LayerNormalization: mean / unbiased std over the true F features ----
    if f_valid == fp:
        mean = jnp.mean(x, axis=-1, keepdims=True)
        centered = x - mean
    else:
        # Padded lanes are zero, so the plain sum already equals the true sum.
        mean = jnp.sum(x, axis=-1, keepdims=True) * (1.0 / f_valid)
        lane = jax.lax.broadcasted_iota(jnp.int32, x.shape, 1)
        centered = jnp.where(lane < f_valid, x - mean, 0.0)

    # torch.std is unbiased (ddof=1). F == 1 is degenerate (torch yields NaN);
    # we clamp the divisor to avoid a trace-time ZeroDivisionError.
    denom = max(f_valid - 1, 1)
    var = jnp.sum(centered * centered, axis=-1, keepdims=True) * (1.0 / denom)
    std = jnp.sqrt(var)

    # EUP reciprocal instead of a VPU divide; fold alpha into the scale.
    scale = alpha * pl.reciprocal(std + EPS, approx=True)
    normed = centered * scale + beta
    # Padded lanes of `normed` hold `beta`, but the matching rows of W are zero,
    # so they contribute nothing to the matmul.

    # ---- sublayer: Linear(F, F) on the MXU (bf16 operands, f32 accumulate) ----
    sub = jnp.dot(normed.astype(jnp.bfloat16), w_ref[...],
                  preferred_element_type=jnp.float32) + b_ref[...]

    # ---- dropout (eval mode) = identity; residual add ----
    # TODO(synk): training-mode dropout would need pltpu.prng_seed/prng_random_bits.
    o_ref[...] = (x + sub).astype(o_ref.dtype)


def residual_connection(x, w, b, alpha, bias, *, tm=512):
    """x: [B, S, F] f32. Returns x + Linear(LayerNorm(x)) (dropout = eval mode).

    tm: row-tile size; tune per generation (e.g. 512-1024 on v5e/v6e, 256-512 on
    v7x's 64 MiB VMEM). It is clamped/aligned to a multiple of 8 automatically.
    """
    B, S, F = x.shape
    N = B * S

    # Lane-dense feature dim (multiple of 128) and sublane-aligned row tile.
    Fp = _round_up(F, 128)
    tm = _round_up(max(8, min(tm, _round_up(N, 8))), 8)
    Np = _round_up(N, tm)
    grid = Np // tm

    x2d = x.reshape(N, F)
    if (Np, Fp) != (N, F):
        x2d = jnp.pad(x2d, ((0, Np - N), (0, Fp - F)))
    wp = jnp.pad(w, ((0, Fp - F), (0, Fp - F))) if Fp != F else w
    wp = wp.astype(jnp.bfloat16)
    bp = jnp.pad(b, (0, Fp - F)) if Fp != F else b
    b2d = bp.reshape(1, Fp).astype(jnp.float32)
    ab = jnp.stack([jnp.asarray(alpha, dtype=jnp.float32).reshape(()),
                    jnp.asarray(bias, dtype=jnp.float32).reshape(())])

    kernel = functools.partial(_residual_kernel, f_valid=F)

    out = pl.pallas_call(
        kernel,
        out_shape=jax.ShapeDtypeStruct((Np, Fp), x.dtype),
        grid_spec=pltpu.PrefetchScalarGridSpec(
            num_scalar_prefetch=0,
            grid=(grid,),
            in_specs=[
                pl.BlockSpec((tm, Fp), lambda i: (i, 0)),           # x row tile
                pl.BlockSpec((Fp, Fp), lambda i: (0, 0)),           # W resident
                pl.BlockSpec((1, Fp), lambda i: (0, 0)),            # b resident
                pl.BlockSpec(memory_space=pltpu.MemorySpace.SMEM),  # (alpha, bias)
            ],
            out_specs=pl.BlockSpec((tm, Fp), lambda i: (i, 0)),
        ),
        compiler_params=pltpu.CompilerParams(
            # Row tiles are independent -> shard across TensorCores (2x on v7x).
            dimension_semantics=("parallel",),
        ),
        cost_estimate=pl.CostEstimate(
            flops=2 * Np * Fp * Fp + 10 * Np * Fp,
            transcendentals=2 * Np,
            bytes_accessed=2 * Np * Fp * 4 + Fp * Fp * 2 + Fp * 4,
        ),
        # Each x tile is fully read into VMEM before its output tile is written,
        # so in-place aliasing of the (padded) x slab with the output is safe.
        input_output_aliases={0: 0},
    )(x2d, wp, b2d, ab)

    return out[:N, :F].reshape(B, S, F)


def _reference(x, w, b, alpha, bias):
    mean = jnp.mean(x, axis=-1, keepdims=True)
    std = jnp.std(x, axis=-1, keepdims=True, ddof=1)
    normed = alpha * (x - mean) / (std + EPS) + bias
    sub = jnp.einsum("bsf,fg->bsg", normed, w) + b
    return x + sub


if __name__ == "__main__":
    B, S, F = 2, 8, 32
    key = jax.random.PRNGKey(0)
    kx, kw, kb = jax.random.split(key, 3)

    x = jax.random.normal(kx, (B, S, F), dtype=jnp.float32)
    # deterministic sublayer (Linear) parameters
    w = jax.random.normal(kw, (F, F), dtype=jnp.float32) * 0.05
    b = jax.random.normal(kb, (F,), dtype=jnp.float32) * 0.01
    # LayerNormalization parameters (init: ones / zeros, scalar each)
    alpha = jnp.ones((), dtype=jnp.float32)
    bias = jnp.zeros((), dtype=jnp.float32)

    # Reference first (kernel donates only its private padded copy of x).
    ref = _reference(x, w, b, alpha, bias)

    # tm=8 -> grid of 2 row tiles even at this tiny test size (pipelined path).
    out = residual_connection(x, w, b, alpha, bias, tm=8)
    out = jax.block_until_ready(out)

    assert out.shape == (B, S, F)
    # bf16 MXU operands (f32 accumulation) -> compare at bf16-level tolerance.
    assert jnp.allclose(out, ref, atol=1e-2, rtol=1e-2), "mismatch vs reference"
    print("KERNEL_OK")
</pallas_src>

<mosaic_0001>
module attributes {stable_mosaic.version = 11 : i64} {
  func.func @_residual_kernel(%arg0: i32, %arg1: memref<8x128xf32, #tpu.memory_space<vmem>>, %arg2: memref<128x128xbf16, #tpu.memory_space<vmem>>, %arg3: memref<1x128xf32, #tpu.memory_space<vmem>>, %arg4: memref<2xf32, #tpu.memory_space<smem>>, %arg5: memref<8x128xf32, #tpu.memory_space<vmem>>) attributes {dimension_semantics = [#tpu.dimension_semantics<parallel>], iteration_bounds = array<i64: 2>, scalar_prefetch = 0 : i64, scratch_operands = 0 : i64, tpu.core_type = #tpu.core_type<tc>, window_params = [{transform_indices = @transform_0, window_bounds = array<i64: 8, 128>}, {pipeline_mode = #tpu.pipeline_mode<synchronous>, transform_indices = @transform_1, window_bounds = array<i64: 128, 128>}, {pipeline_mode = #tpu.pipeline_mode<synchronous>, transform_indices = @transform_2, window_bounds = array<i64: 1, 128>}, {transform_indices = @transform_3, window_bounds = array<i64: 2>}, {transform_indices = @transform_4, window_bounds = array<i64: 8, 128>}]} {
    %c0 = arith.constant 0 : index
    %c0_0 = arith.constant 0 : index
    %0 = vector.load %arg1[%c0, %c0_0] : memref<8x128xf32, #tpu.memory_space<vmem>>, vector<8x128xf32>
    %c0_1 = arith.constant 0 : index
    %1 = memref.load %arg4[%c0_1] : memref<2xf32, #tpu.memory_space<smem>>
    %c1 = arith.constant 1 : index
    %2 = memref.load %arg4[%c1] : memref<2xf32, #tpu.memory_space<smem>>
    %cst = arith.constant dense<0.000000e+00> : vector<8xf32>
    %3 = vector.multi_reduction <add>, %0, %cst [1] : vector<8x128xf32> to vector<8xf32>
    %4 = vector.shape_cast %3 : vector<8xf32> to vector<8x1xf32>
    %cst_2 = arith.constant 3.125000e-02 : f32
    %5 = vector.broadcast %cst_2 : f32 to vector<8x1xf32>
    %6 = arith.mulf %4, %5 : vector<8x1xf32>
    %7 = tpu.iota {dimensions = array<i32: 1>} : vector<8x128xi32>
    %c32_i32 = arith.constant 32 : i32
    %8 = vector.broadcast %c32_i32 : i32 to vector<8x128xi32>
    %9 = arith.cmpi slt, %7, %8 : vector<8x128xi32>
    %10 = vector.broadcast %6 : vector<8x1xf32> to vector<8x128xf32>
    %11 = arith.subf %0, %10 : vector<8x128xf32>
    %cst_3 = arith.constant 0.000000e+00 : f32
    %12 = vector.broadcast %cst_3 : f32 to vector<8x128xf32>
    %13 = arith.select %9, %11, %12 : vector<8x128xi1>, vector<8x128xf32>
    %14 = arith.mulf %13, %13 : vector<8x128xf32>
    %cst_4 = arith.constant dense<0.000000e+00> : vector<8xf32>
    %15 = vector.multi_reduction <add>, %14, %cst_4 [1] : vector<8x128xf32> to vector<8xf32>
    %16 = vector.shape_cast %15 : vector<8xf32> to vector<8x1xf32>
    %cst_5 = arith.constant 0.0322580636 : f32
    %17 = vector.broadcast %cst_5 : f32 to vector<8x1xf32>
    %18 = arith.mulf %16, %17 : vector<8x1xf32>
    %19 = math.sqrt %18 : vector<8x1xf32>
    %cst_6 = arith.constant 9.99999997E-7 : f32
    %20 = vector.broadcast %cst_6 : f32 to vector<8x1xf32>
    %21 = arith.addf %19, %20 : vector<8x1xf32>
    %22 = tpu.reciprocal %21 {approx = true} : vector<8x1xf32> -> vector<8x1xf32>
    %23 = vector.broadcast %1 : f32 to vector<8x1xf32>
    %24 = arith.mulf %23, %22 : vector<8x1xf32>
    %25 = vector.broadcast %24 : vector<8x1xf32> to vector<8x128xf32>
    %26 = arith.mulf %13, %25 : vector<8x128xf32>
    %27 = vector.broadcast %2 : f32 to vector<8x128xf32>
    %28 = arith.addf %26, %27 : vector<8x128xf32>
    %29 = arith.truncf %28 : vector<8x128xf32> to vector<8x128xbf16>
    %c0_7 = arith.constant 0 : index
    %c0_8 = arith.constant 0 : index
    %30 = vector.load %arg2[%c0_7, %c0_8] : memref<128x128xbf16, #tpu.memory_space<vmem>>, vector<128x128xbf16>
    %cst_9 = arith.constant dense<0.000000e+00> : vector<8x128xf32>
    %31 = tpu.matmul %29, %30, %cst_9 {dimension_numbers = #tpu.dot_dimension_numbers<[1], [0], [0], [1], [0, 0, 1, 1], [], []>} : vector<8x128xbf16>, vector<128x128xbf16>, vector<8x128xf32> -> vector<8x128xf32>
    %c0_10 = arith.constant 0 : index
    %c0_11 = arith.constant 0 : index
    %32 = vector.load %arg3[%c0_10, %c0_11] : memref<1x128xf32, #tpu.memory_space<vmem>>, vector<1x128xf32>
    %33 = vector.broadcast %32 : vector<1x128xf32> to vector<8x128xf32>
    %34 = arith.addf %31, %33 : vector<8x128xf32>
    %35 = arith.addf %0, %34 : vector<8x128xf32>
    %c0_12 = arith.constant 0 : index
    %c0_13 = arith.constant 0 : index
    %36 = vector.load %arg5[%c0_12, %c0_13] : memref<8x128xf32, #tpu.memory_space<vmem>>, vector<8x128xf32>
    tpu.vector_store %arg5[%c0_12, %c0_13], %35 {strides = array<i32>} : memref<8x128xf32, #tpu.memory_space<vmem>>, vector<8x128xf32>,
    return
  }
  func.func @transform_0(%arg0: i32) -> (i32, i32) {
    %c0_i32 = arith.constant 0 : i32
    %c0_i32_0 = arith.constant 0 : i32
    return %arg0, %c0_i32 : i32, i32
  }
  func.func @transform_1(%arg0: i32) -> (i32, i32) {
    %c0_i32 = arith.constant 0 : i32
    %c0_i32_0 = arith.constant 0 : i32
    %c0_i32_1 = arith.constant 0 : i32
    return %c0_i32, %c0_i32_0 : i32, i32
  }
  func.func @transform_2(%arg0: i32) -> (i32, i32) {
    %c0_i32 = arith.constant 0 : i32
    %c0_i32_0 = arith.constant 0 : i32
    %c0_i32_1 = arith.constant 0 : i32
    return %c0_i32, %c0_i32_0 : i32, i32
  }
  func.func @transform_3(%arg0: i32) -> i32 {
    %c0_i32 = arith.constant 0 : i32
    %c0_i32_0 = arith.constant 0 : i32
    return %c0_i32 : i32
  }
  func.func @transform_4(%arg0: i32) -> (i32, i32) {
    %c0_i32 = arith.constant 0 : i32
    %c0_i32_0 = arith.constant 0 : i32
    return %arg0, %c0_i32 : i32, i32
  }
}

</mosaic_0001>

<bundles_post_ra>
// kernel: tpu_custom_call.1
= control target key start
LH: loop header
LB: loop body
LE: loop exit
PB: predicated region body
PF: predicated region fallthrough
CT: control target
= control target key end

     0   :  { %9 = vsyncpa [#allocation3], 0  ;;  %s1038_s0 = inlined_call_operand.hbm [shape: f32[16,128], index: 0, kind: input, shape index: {}, may-alias: {0,4}]   ;;  %s1039_s1 = inlined_call_operand.hbm [shape: bf16[128,128], index: 1, kind: input, shape index: {}]   ;;  %s1040_s2 = inlined_call_operand.vmem [shape: f32[1,128], index: 2, kind: input, shape index: {}]   ;;  %s1041_s3 = inlined_call_operand.vmem [shape: f32[2], index: 3, kind: input, shape index: {}]   ;;  %s1042_s4 = inlined_call_operand.hbm [shape: f32[16,128], index: 4, kind: output, shape index: {}, may-alias: {0,4}]  }
   0x1   :  { %11 = vsyncpa [#allocation3 + $0x1], 0 }
   0x2   :  { %12 = vsyncpa [#allocation7], 0 }
   0x3   :  { %13 = vsyncpa [#allocation5], 0 }
   0x4   :  { %14 = vsyncpa [#allocation4], 0 }
   0x5   :  { %16 = vsyncpa [#allocation4 + $0x1], 0  ;;  %s812_s15 = smov 0   ;;  %s814_s16 = smov 0  }
   0x6   :  { %s816_s17 = smov 0   ;;  %s818_s18 = smov 0  }
   0x7 LB: > { %s833_s19 = sadd.s32 4294967295, %s777_s18   ;;  %s492_s20 = sadd.s32 4294967294, %s777_s18   ;;  %s777_s18 = sphi %s818_s18, %s1064_s18   ;;  %s773_s17 = sphi %s816_s17, %s1063_s17   ;;  %s769_s16 = sphi %s814_s16, %s1062_s16   ;;  %s765_s15 = sphi %s812_s15, %s1061_s15  }
   0x8   : > { %p42_p0 = scmp.ne.s32.totalorder %s769_s16, %s765_s15  ;;  %p1043_p1 = scmp.eq.s32.totalorder %s833_s19, 0 }
   0x9   : > { %p135_p3 = scmp.eq.s32.totalorder %s492_s20, 1  ;;  %p493_p5 = scmp.ge.s32.totalorder %s777_s18, 1 }
   0xa   : > { %p842_p4 = por %p1043_p1, %p42_p0  ;;  %p142_p7 = scmp.lt.s32.totalorder %s777_s18, 3 }
   0xb   : > { %p847_p6 = por %p135_p3, %p42_p0  ;;  %s779_s24 = smov [#allocation6]  }
   0xc   : > { %s1046_s21 = scalar_select %p842_p4, 1, 0 }
   0xd   : > { %s1047_s22 = scalar_select %p847_p6, 1, 0 }
   0xe   : > { %p852_p8 = pnand %p493_p5, %p142_p7  ;;  %s154_s25 = sshll.u32 %s779_s24, 4  ;;  %s155_s25 = int_to_ptr.vmem [resolvable:$true] %s154_s25 }
   0xf   : > { %s171_s28 = sshll.u32 %s1041_s3, 4  ;;  %s630_s6 = scalar_lea.hbm %s1039_s1, 1024  ;;  %s868_s28 = int_to_ptr.vmem [resolvable:$true] %s171_s28 }
  0x10   : > { %s1048_s23 = scalar_select %p852_p8, 1, 0 }
  0x11   : > { %p559_p9 = pneg %p852_p8  ;;  %p631_p12 = scmp.ne.s32.totalorder %s1039_s1, %s630_s6 }
  0x12   : > { %p637_p5 = scmp.lt.u32.totalorder %s630_s6, %s1039_s1 }
  0x13   : > { %p864_p11 = pnand %p559_p9, %p1043_p1 }
  0x15   : > { %p632_p13 = pneg %p864_p11 }
  0x17   : > { %p633_p0 = pnand %p632_p13, %p631_p12 }
  0x19   : > { %p634_p3 = pneg %p633_p0 }
  0x1b   : > { %p639_p7 = pnand %p637_p5, %p634_p3 }
  0x1d   : > { %642 = shalt.err (!%p639_p7)
}
  0x1e   : > { %s643_s11 = scalar_lea.vmem %s155_s25, 1024  ;;  %p651_p2 = scmp.lt.s32.totalorder %s155_s25, %s155_s25 }
  0x1f   : > { %p644_p9 = scmp.ne.s32.totalorder %s155_s25, %s643_s11  ;;  %p652_p6 = scmp.lt.s32.totalorder %s643_s11, %s643_s11 }
  0x21   : > { %p646_p10 = pnand %p644_p9, %p632_p13  ;;  %p653_p4 = por %p652_p6, %p651_p2 }
  0x23   : > { %p647_p1 = pneg %p646_p10 }
  0x25   : > { %p654_p8 = pnand %p653_p4, %p647_p1 }
  0x27   : > { %657 = shalt.err (!%p654_p8)
}
  0x28   : > { %s780_s12 = smov 64   ;;  %s781_s13 = smov 4  }
  0x29   : > { %562 = dma.hbm_to_vmem [thread:$0]  (!%p864_p11), %s1039_s1, 1024, %s155_s25, [#allocation7], %s780_s12, %s780_s12, %s781_s13  }
  0x2a   : > { %s658_s24 = scalar_lea.vmem %s868_s28, 16  ;;  %p666_p1 = scmp.lt.s32.totalorder %s868_s28, %s868_s28 }
  0x2b   : > { %p659_p12 = scmp.ne.s32.totalorder %s868_s28, %s658_s24  ;;  %p667_p4 = scmp.lt.s32.totalorder %s658_s24, %s658_s24 }
  0x2d   : > { %p661_p10 = pnand %p659_p12, %p632_p13  ;;  %p668_p6 = por %p667_p4, %p666_p1 }
  0x2f   : > { %p662_p2 = pneg %p661_p10 }
  0x31   : > { %p669_p8 = pnand %p668_p6, %p662_p2 }
  0x33   : > { %672 = shalt.err (!%p669_p8)
}
  0x34   : > { %s782_s26 = smov [#allocation8]   ;;  %s903_s25 = sadd.s32 1, %s777_s18  }
  0x35   : > { %565 = dma.vmem_to_smem (!%p864_p11), %s868_s28, 16, %s782_s26, [#allocation5]  }
  0x36   : > { %s29_s27 = sadd.s32 1, %s773_s17  ;;  %s26_s30 = ssub.s32 %s777_s18, %s903_s25 }
  0x37   : > { %p36_p13 = scmp.ne.s32.totalorder %s773_s17, %s769_s16  ;;  %p27_p0 = scmp.eq.s32.totalorder %s26_s30, 0 }
  0x38   : > { %p37_p3 = scmp.eq.s32.totalorder %s777_s18, 0  ;;  %p1050_p5 = scmp.eq.s32.totalorder %s833_s19, 1 }
  0x39   : > { %p576_p9 = scmp.lt.s32.totalorder %s777_s18, 2  ;;  %s182_s6 = sand.u32 1, %s773_s17  }
  0x3a   : > { %p913_p7 = por %p1050_p5, %p36_p13  ;;  %p38_p12 = por %p37_p3, %p36_p13 }
  0x3b   : > { %s919_s5 = scalar_select %p27_p0, %s773_s17, %s29_s27  }
  0x3c   : > { %s497_s7 = sshll.u32 %s182_s6, 3  ;;  %s498_s28 = sshll.u32 %s777_s18, 7 }
  0x3d   : > { %s926_s10 = scalar_lea.hbm %s1038_s0, %s498_s28  ;;  %s186_s11 = scalar_lea.vmem [#allocation2], %s497_s7 }
  0x3e   : > { %s193_s12 = sshll.u32 %s186_s11, 4  ;;  %p930_p11 = pnand %p576_p9, %p38_p12  ;;  %s928_s12 = int_to_ptr.vmem [resolvable:$true] %s193_s12 }
  0x3f   : > { %s183_s14 = scalar_lea.sflag [#allocation3], %s182_s6  ;;  %s673_s20 = scalar_lea.hbm %s926_s10, 128 }
  0x40   : > { %p674_p10 = scmp.ne.s32.totalorder %s926_s10, %s673_s20  ;;  %p675_p2 = pneg %p930_p11 }
  0x41   : > { %s678_s27 = scalar_lea.hbm %s1038_s0, 256  ;;  %p679_p6 = scmp.lt.u32.totalorder %s926_s10, %s1038_s0 }
  0x42   : > { %p676_p1 = pnand %p675_p2, %p674_p10  ;;  %p680_p8 = scmp.lt.u32.totalorder %s678_s27, %s673_s20 }
  0x43   : > { %p682_p0 = scmp.lt.u32.totalorder %s673_s20, %s926_s10 }
  0x44   : > { %p677_p4 = pneg %p676_p1  ;;  %p681_p13 = por %p680_p8, %p679_p6 }
  0x46   : > { %p683_p3 = por %p682_p0, %p681_p13 }
  0x48   : > { %p684_p5 = pnand %p683_p3, %p677_p4 }
  0x4a   : > { %687 = shalt.err (!%p684_p5)
}
  0x4b   : > { %s688_s6 = scalar_lea.vmem %s928_s12, 128  ;;  %s783_s28 = smov [#allocation2]  }
  0x4c   : > { %p689_p9 = scmp.ne.s32.totalorder %s928_s12, %s688_s6  ;;  %s693_s8 = sshll.u32 %s783_s28, 4  ;;  %s694_s8 = int_to_ptr.vmem [resolvable:$false] %s693_s8 }
  0x4d   : > { %s695_s9 = scalar_lea.vmem %s694_s8, 256  ;;  %p696_p1 = scmp.lt.s32.totalorder %s928_s12, %s694_s8 }
  0x4e   : > { %p691_p12 = pnand %p689_p9, %p675_p2  ;;  %p697_p6 = scmp.lt.s32.totalorder %s695_s9, %s688_s6 }
  0x50   : > { %p692_p10 = pneg %p691_p12  ;;  %p698_p8 = por %p697_p6, %p696_p1 }
  0x52   : > { %p699_p13 = pnand %p698_p8, %p692_p10 }
  0x54   : > { %702 = shalt.err (!%p699_p13)
}
  0x55   : > { %569 = dma.hbm_to_vmem [thread:$0]  (!%p930_p11), %s926_s10, 128, %s928_s12, %s183_s14  }
  0x56   : > { %p1053_p4 = scmp.ne.s32.totalorder %s1048_s23, 0 }
  0x57   : > { %s962_s11 = sand.u32 (!%p1053_p4), 1, %s769_s16   ;;  %p1054_p2 = scmp.ne.s32.totalorder (!%p1053_p4), %s1046_s21, 0 }
  0x58   : > { %202 = sbr.rel (%p1053_p4) target bundleno = 665 (0x299), region = 36  ;;  %s500_s20 = sshll.u32 (!%p1053_p4), %s962_s11, 3 }
  0x59   : > { %s205_s24 = scalar_lea.sflag (!%p1053_p4), [#allocation3], %s962_s11  ;;  %s208_s26 = scalar_lea.vmem (!%p1053_p4), [#allocation2], %s500_s20 }
  0x5f   : > { %748 = dma.done.wait (%p1054_p2), %s205_s24, 128  }
  0x60   : > { %750 = vsyncadd (%p1054_p2), %s205_s24, 4294967168  ;;  %p1055_p11 = scmp.eq.s32.totalorder %s833_s19, 0 }
  0x62   : > { %752 = dma.done.wait (%p1055_p11), [#allocation7], 1024   ;;  %p1056_p0 = pmov %p1055_p11 }
  0x64   : > { %754 = vsyncadd (%p1056_p0), [#allocation7], 4294966272  ;;  %p1057_p3 = pmov %p1056_p0 }
  0x65   : > { %p1058_p5 = pmov %p1056_p0 }
  0x66   : > { %756 = dma.done.wait (%p1057_p3), [#allocation5], 16  }
  0x67   : > { %758 = vsyncadd (%p1058_p5), [#allocation5], 4294967280 }
  0x68   : > { %221 = sfence }
  0x69   : > { %v980_v0 = vld [vmem:[%s208_s26] sm:$0xff]  ;;  %v249_v1 = vlaneseq  ;;  %v618_v8 = vld [vmem:[#allocation6] sm:$0xff]   ;;  %v784_v9 = vmov 0.0   ;;  %v619_v10 = vld [vmem:[#allocation6 + $0x8] sm:$0xff]   ;;  %vm785_vm1 = vmmov 0   ;;  %s244_s21 = sld [smem:[#allocation8]] }
  0x6a   : > { %246 = vadd.xlane.f32.xlu0 %v980_v0  ;;  %527 = vmatprep.subr.bf16.mxu0 %v784_v9  ;;  %v620_v11 = vld [vmem:[#allocation6 + $0x10] sm:$0xff]   ;;  %v621_v12 = vld [vmem:[#allocation6 + $0x18] sm:$0xff]   ;;  %v622_v13 = vld [vmem:[#allocation6 + $0x20] sm:$0xff]   ;;  %s504_s23 = sld [smem:[#allocation8 + $0x1]]  ;;  %s515_s13 = sshll.u32 %s833_s19, 7 }
  0x6b   : > { %v250_v2 = vand.u32 127, %v249_v1  ;;  %528 = vmatpush3.bf16.msra.mxu0 %v618_v8  ;;  %543 = vmatprep.mubr.msk.bf16.mxu0 %vm785_vm1, %v784_v9  ;;  %v623_v14 = vld [vmem:[#allocation6 + $0x28] sm:$0xff]   ;;  %v624_v15 = vld [vmem:[#allocation6 + $0x30] sm:$0xff]   ;;  %v625_v16 = vld [vmem:[#allocation6 + $0x38] sm:$0xff]   ;;  %s241_s14 = scalar_lea.vmem [#allocation9], %s500_s20  ;;  %s994_s6 = scalar_lea.hbm %s1042_s4, %s515_s13 }
  0x6c   : > { %529 = vmatprep.subr.bf16.mxu0 %v784_v9  ;;  %v505_v32 = vld [vmem:[%s1040_s2] ss:$0 sm:$0xff]  ;;  %s400_s27 = sshll.u32 %s241_s14, 4  ;;  %s387_s19 = scalar_lea.sflag [#allocation4], %s962_s11  ;;  %s996_s27 = int_to_ptr.vmem [resolvable:$true] %s400_s27 }
  0x6d   : > { %vm251_vm0 = vcmp.lt.s32.totalorder %v250_v2, 32  ;;  %s703_s28 = scalar_lea.vmem %s996_s27, 128  ;;  %s786_s8 = smov [#allocation9]  }
  0x6e   : > { %p704_p9 = scmp.ne.s32.totalorder %s996_s27, %s703_s28  ;;  %s707_s9 = sshll.u32 %s786_s8, 4  ;;  %s708_s9 = int_to_ptr.vmem [resolvable:$false] %s707_s9 }
  0x6f   : > { %530 = vmatpush3.bf16.msra.mxu0 %v619_v10  ;;  %v267_v25 = vstv %s244_s21  ;;  %s709_s20 = scalar_lea.vmem %s708_s9, 256  ;;  %p710_p1 = scmp.lt.s32.totalorder %s996_s27, %s708_s9 }
  0x70   : > { %531 = vmatprep.subr.bf16.mxu0 %v784_v9  ;;  %v270_v28 = vstv %s504_s23  ;;  %p705_p12 = pnand %p704_p9, %p913_p7  ;;  %p711_p6 = scmp.lt.s32.totalorder %s709_s20, %s703_s28 }
  0x72   : > { %p706_p10 = pneg %p705_p12  ;;  %p712_p8 = por %p711_p6, %p710_p1 }
  0x73   : > { %532 = vmatpush3.bf16.msra.mxu0 %v620_v11 }
  0x74   : > { %533 = vmatprep.subr.bf16.mxu0 %v784_v9  ;;  %p713_p13 = pnand %p712_p8, %p706_p10 }
  0x77   : > { %534 = vmatpush3.bf16.msra.mxu0 %v621_v12 }
  0x78   : > { %535 = vmatprep.subr.bf16.mxu0 %v784_v9 }
  0x7b   : > { %536 = vmatpush3.bf16.msra.mxu0 %v622_v13 }
  0x7c   : > { %537 = vmatprep.subr.bf16.mxu0 %v784_v9 }
  0x7f   : > { %538 = vmatpush3.bf16.msra.mxu0 %v623_v14 }
  0x80   : > { %539 = vmatprep.subr.bf16.mxu0 %v784_v9 }
  0x83   : > { %540 = vmatpush3.bf16.msra.mxu0 %v624_v15 }
  0x84   : > { %541 = vmatprep.subr.bf16.mxu0 %v784_v9 }
  0x87   : > { %542 = vmatpush3.bf16.msra.mxu0 %v625_v16 }
  0xf7   : > { %v247_v3 = vpop.xlane.xlu0 %246 }
  0xf8   : > { %v248_v4 = vmul.f32 0.03125, %v247_v3 }
  0xfa   : > { %v252_v5 = vsub.f32 %v980_v0, %v248_v4 }
  0xfc   : > { %v253_v6 = vsel %vm251_vm0, %v252_v5, 0.0 }
  0xfd   : > { %v254_v7 = vmul.f32 %v253_v6, %v253_v6 }
  0xff   : > { %255 = vadd.xlane.f32.xlu0 %v254_v7 }
 0x18c   : > { %v256_v17 = vpop.xlane.xlu0 %255 }
 0x18d   : > { %v257_v18 = vmul.f32 0.032258064, %v256_v17 }
 0x18f   : > { %626 = vrsqrt.f32 %v257_v18  ;;  %vm260_vm2 = vcmp.eq.f32.partialorder %v257_v18, inf  ;;  %v263_v21 = vand.u32 2147483648, %v257_v18  ;;  %vm262_vm3 = vcmp.eq.f32.partialorder %v257_v18, 0.0 }
 0x199   : > { %v627_v19 = vpop.eup %626 }
 0x19a   : > { %v259_v20 = vmul.f32 %v627_v19, %v257_v18 }
 0x19c   : > { %v261_v22 = vsel %vm260_vm2, %v257_v18, %v259_v20 }
 0x19d   : > { %v264_v23 = vsel %vm262_vm3, %v263_v21, %v261_v22 }
 0x19e   : > { %v265_v24 = vadd.f32 1e-06, %v264_v23 }
 0x1a0   : > { %628 = vrcp.f32 %v265_v24 }
 0x1aa   : > { %v629_v26 = vpop.eup %628 }
 0x1ab   : > { %v268_v27 = vmul.f32 %v629_v26, %v267_v25 }
 0x1ad   : > { %v269_v29 = vmul.f32 %v268_v27, %v253_v6 }
 0x1af   : > { %v271_v30 = vadd.f32 %v270_v28, %v269_v29 }
 0x1b1   : > { %v272_v31 = vpack.c.bf16 %v271_v30, %v271_v30 }
 0x1b3   : > { %544 = vmatmul.mubr.bf16.vlgmr.msra.gmra.mrb[0].mxu0 %v272_v31 }
 0x286   : > { %v378_v33 = vpop.f32.mrb[0].mxu0 }
 0x287   : > { %v379_v34 = vadd.f32 %v505_v32, %v378_v33  ;;  %v545_v35 = vpop.f32.mrb[1].mxu0 }
 0x288   : > { %v381_v36 = vpop.f32.mrb[2].mxu0 }
 0x289   : > { %v384_v37 = vadd.f32 %v379_v34, %v980_v0  ;;  %v546_v38 = vpop.f32.mrb[3].mxu0 }
 0x28b   : > { %385 = vst [vmem:[%s241_s14] sm:$0xff] %v384_v37 }
 0x28c   : > { %716 = shalt.err (!%p713_p13)
}
 0x28d   : > { %s717_s11 = scalar_lea.hbm %s994_s6, 128  ;;  %s721_s21 = scalar_lea.hbm %s1042_s4, 256 }
 0x28e   : > { %p718_p4 = scmp.ne.s32.totalorder %s994_s6, %s717_s11  ;;  %p722_p0 = scmp.lt.u32.totalorder %s994_s6, %s1042_s4 }
 0x28f   : > { %p723_p3 = scmp.lt.u32.totalorder %s721_s21, %s717_s11  ;;  %p725_p9 = scmp.lt.u32.totalorder %s717_s11, %s994_s6 }
 0x290   : > { %p719_p2 = pnand %p718_p4, %p913_p7 }
 0x291   : > { %p724_p5 = por %p723_p3, %p722_p0 }
 0x292   : > { %p720_p11 = pneg %p719_p2 }
 0x293   : > { %p726_p12 = por %p725_p9, %p724_p5 }
 0x295   : > { %p727_p10 = pnand %p726_p12, %p720_p11 }
 0x297   : > { %730 = shalt.err (!%p727_p10)
}
 0x298   : > { %557 = dma.vmem_to_hbm [thread:$0]  (%p913_p7), %s996_s27, 128, %s994_s6, %s387_s19  }
 0x299 PF: > { %s412_s12 = sand.u32 1, %s765_s15   ;;  %p1059_p1 = scmp.ne.s32.totalorder %s1047_s22, 0 }
 0x29a   : > { %p1060_p6 = scmp.ge.s32.totalorder %s777_s18, 2  ;;  %s413_s13 = scalar_lea.sflag [#allocation4], %s412_s12 }
 0x29c   : > { %p571_p8 = pnand %p1060_p6, %p1059_p1 }
 0x29e   : > { %760 = dma.done.wait (!%p571_p8), %s413_s13, 128  }
 0x29f   : > { %762 = vsyncadd (!%p571_p8), %s413_s13, 4294967168  ;;  %p19_p13 = scmp.ge.s32.totalorder %s903_s25, 4   ;;  %s1061_s15 = smov %s769_s16 }
 0x2a0   : > { %s1062_s16 = smov %s773_s17  ;;  %s1063_s17 = smov %s919_s5 }
 0x2a1   : > { %s1064_s18 = smov %s903_s25  ;;  %21 = sbr.rel (!%p19_p13) target bundleno = 7 (0x7), region = 90 }
 0x2a8   :  { %418 = vsyncpa [#allocation3], 1 }
 0x2a9   :  { %420 = vsyncpa [#allocation3 + $0x1], 1 }
 0x2aa   :  { %421 = vsyncpa [#allocation7], 1 }
 0x2ab   :  { %422 = vsyncpa [#allocation4], 1 }
 0x2ac   :  { %424 = vsyncpa [#allocation4 + $0x1], 1 }
 0x2ad   :  { %425 = vsyncpa [#allocation5], 1 }
 0x2ae   :  { %427 = vsyncpa [#allocation5 + $0x1], 1 }

</bundles_post_ra>
